<compile_context>
chip_gen: v5e
topology: v5e:2x2
jax: 0.10.0
libtpu: 0.0.40
codegen_flags: <defaults>
</compile_context>

<pallas_src>
import jax
import jax.numpy as jnp
from jax.experimental import pallas as pl
from jax.experimental.pallas import tpu as pltpu

LANE = 128
SUBLANE = 8


def self_attention_kernel(x_ref, wqkv_ref, o_ref):
    # x_ref:    (S, d_in_p)         bf16, VMEM   (d_in_p: multiple of 8, NOT padded to 128)
    # wqkv_ref: (d_in_p, 3*d_out_p) bf16, VMEM   (Q block pre-scaled by 1/sqrt(d_out))
    # o_ref:    (S, d_out_p)        f32,  VMEM   (lane-dense: d_out_p is a 128 multiple)

    # Single fused QKV projection: bf16 operands on the MXU, f32 accumulation.
    qkv = jnp.dot(x_ref[...], wqkv_ref[...], preferred_element_type=jnp.float32)

    dp = o_ref.shape[-1]                      # d_out_p -> slices land on 128-lane boundaries
    q = qkv[:, :dp].astype(jnp.bfloat16)      # already scaled by 1/sqrt(d_out)
    k = qkv[:, dp:2 * dp].astype(jnp.bfloat16)
    v = qkv[:, 2 * dp:3 * dp].astype(jnp.bfloat16)

    # scores = q @ k^T without an explicit transpose (contract last dims on the MXU).
    scores = jax.lax.dot_general(
        q, k, (((1,), (1,)), ((), ())), preferred_element_type=jnp.float32)  # (S, S) f32

    # Numerically stable softmax over keys, elementwise math kept in f32.
    scores = scores - jnp.max(scores, axis=-1, keepdims=True)
    e = jnp.exp(scores)
    inv_denom = pl.reciprocal(jnp.sum(e, axis=-1, keepdims=True), approx=True)  # EUP

    # Normalize AFTER the PV matmul: one multiply over (S, d_out_p), not (S, S).
    ctx = jnp.dot(e.astype(jnp.bfloat16), v, preferred_element_type=jnp.float32)
    o_ref[...] = (ctx * inv_denom).astype(o_ref.dtype)


def prepare_fused_qkv_weight(Wq, Wk, Wv):
    """Hoisted weight prep: PyTorch (d_out, d_in) Linear weights -> fused bf16
    (d_in_p, 3*d_out_p) weight [Q*scale | K | V].  Call once, reuse per call."""
    d_out, d_in = Wq.shape
    scale = 1.0 / (d_out ** 0.5)

    d_in_p = pl.cdiv(d_in, SUBLANE) * SUBLANE                  # sublane multiple of 8 only
    d_out_p = max(LANE, pl.cdiv(d_out, LANE) * LANE)           # lane-dense output columns

    def prep(W, col_scale=1.0):
        Wt = (W.astype(jnp.float32) * col_scale).T             # (d_in, d_out)
        return jnp.pad(Wt, ((0, d_in_p - d_in), (0, d_out_p - d_out)))

    wqkv = jnp.concatenate([prep(Wq, scale), prep(Wk), prep(Wv)], axis=1)
    return wqkv.astype(jnp.bfloat16)


def attention_fused(x, wqkv, *, d_out):
    """x: (S, d_in) f32; wqkv: pre-fused bf16 (d_in_p, 3*d_out_p) weight."""
    S, d_in = x.shape
    d_in_p = wqkv.shape[0]
    d_out_p = wqkv.shape[1] // 3

    x_p = x.astype(jnp.bfloat16)
    if d_in_p != d_in:
        x_p = jnp.pad(x_p, ((0, 0), (0, d_in_p - d_in)))

    vmem = pl.BlockSpec(memory_space=pltpu.MemorySpace.VMEM)
    out_p = pl.pallas_call(
        self_attention_kernel,
        out_shape=jax.ShapeDtypeStruct((S, d_out_p), jnp.float32),
        in_specs=[vmem, vmem],
        out_specs=vmem,
    )(x_p, wqkv)

    # Zero-padded Q/K/V columns never affect scores or context; just drop them.
    return out_p[:, :d_out].astype(x.dtype)


def self_attention_v2(x, Wq, Wk, Wv):
    """Convenience wrapper matching the PyTorch module signature."""
    return attention_fused(x, prepare_fused_qkv_weight(Wq, Wk, Wv), d_out=Wq.shape[0])


if __name__ == "__main__":
    # Small shapes consistent with the module: seq=8, d_in=32, d_out=32.
    S, D_IN, D_OUT = 8, 32, 32

    key = jax.random.PRNGKey(0)
    kx, kq, kk, kv = jax.random.split(key, 4)

    x = jax.random.normal(kx, (S, D_IN), dtype=jnp.float32)

    # Deterministic nn.Linear-style init (uniform +-1/sqrt(d_in)), qkv_bias=False.
    bound = 1.0 / (D_IN ** 0.5)
    # PyTorch stores weight as (d_out, d_in).
    Wq = jax.random.uniform(kq, (D_OUT, D_IN), jnp.float32, -bound, bound)
    Wk = jax.random.uniform(kk, (D_OUT, D_IN), jnp.float32, -bound, bound)
    Wv = jax.random.uniform(kv, (D_OUT, D_IN), jnp.float32, -bound, bound)

    # Weight prep hoisted out of the per-call path; attention call jitted.
    wqkv = jax.block_until_ready(prepare_fused_qkv_weight(Wq, Wk, Wv))
    attn = jax.jit(attention_fused, static_argnames="d_out")

    out = attn(x, wqkv, d_out=D_OUT)
    out = jax.block_until_ready(out)

    # Pure-JAX f32 reference (mirrors the PyTorch forward).
    q_ref = x @ Wq.T
    k_ref = x @ Wk.T
    v_ref = x @ Wv.T
    s_ref = (q_ref @ k_ref.T) / (D_OUT ** 0.5)
    w_ref = jax.nn.softmax(s_ref, axis=-1)
    ctx_ref = w_ref @ v_ref

    assert out.shape == (S, D_OUT)
    # Tolerance accounts for bf16 MXU operands (f32 accumulation) and the approx
    # (EUP) reciprocal in the softmax denominator.
    assert jnp.allclose(out, ctx_ref, atol=2e-2, rtol=2e-2)

    print("KERNEL_OK")
</pallas_src>

<mosaic_0001>
module attributes {stable_mosaic.version = 11 : i64} {
  func.func @self_attention_kernel(%arg0: memref<8x32xbf16, #tpu.memory_space<vmem>>, %arg1: memref<32x384xbf16, #tpu.memory_space<vmem>>, %arg2: memref<8x128xf32, #tpu.memory_space<vmem>>) attributes {dimension_semantics = [], scalar_prefetch = 0 : i64, scratch_operands = 0 : i64, tpu.core_type = #tpu.core_type<tc>} {
    %c0 = arith.constant 0 : index
    %c0_0 = arith.constant 0 : index
    %0 = vector.load %arg0[%c0, %c0_0] : memref<8x32xbf16, #tpu.memory_space<vmem>>, vector<8x32xbf16>
    %c0_1 = arith.constant 0 : index
    %c0_2 = arith.constant 0 : index
    %1 = vector.load %arg1[%c0_1, %c0_2] : memref<32x384xbf16, #tpu.memory_space<vmem>>, vector<32x384xbf16>
    %cst = arith.constant dense<0.000000e+00> : vector<8x384xf32>
    %2 = tpu.matmul %0, %1, %cst {dimension_numbers = #tpu.dot_dimension_numbers<[1], [0], [0], [1], [0, 0, 1, 1], [], []>} : vector<8x32xbf16>, vector<32x384xbf16>, vector<8x384xf32> -> vector<8x384xf32>
    %3 = vector.extract_strided_slice %2 {offsets = [0, 0], sizes = [8, 128], strides = [1, 1]} : vector<8x384xf32> to vector<8x128xf32>
    %4 = arith.truncf %3 : vector<8x128xf32> to vector<8x128xbf16>
    %5 = vector.extract_strided_slice %2 {offsets = [0, 128], sizes = [8, 128], strides = [1, 1]} : vector<8x384xf32> to vector<8x128xf32>
    %6 = arith.truncf %5 : vector<8x128xf32> to vector<8x128xbf16>
    %7 = vector.extract_strided_slice %2 {offsets = [0, 256], sizes = [8, 128], strides = [1, 1]} : vector<8x384xf32> to vector<8x128xf32>
    %8 = arith.truncf %7 : vector<8x128xf32> to vector<8x128xbf16>
    %cst_3 = arith.constant dense<0.000000e+00> : vector<8x8xf32>
    %9 = tpu.matmul %4, %6, %cst_3 {dimension_numbers = #tpu.dot_dimension_numbers<[1], [1], [0], [0], [0, 0, 1, 0], [], []>} : vector<8x128xbf16>, vector<8x128xbf16>, vector<8x8xf32> -> vector<8x8xf32>
    %cst_4 = arith.constant dense<0xFF800000> : vector<8xf32>
    %10 = vector.multi_reduction <maximumf>, %9, %cst_4 [1] : vector<8x8xf32> to vector<8xf32>
    %11 = vector.shape_cast %10 : vector<8xf32> to vector<8x1xf32>
    %12 = vector.broadcast %11 : vector<8x1xf32> to vector<8x8xf32>
    %13 = arith.subf %9, %12 : vector<8x8xf32>
    %14 = math.exp %13 : vector<8x8xf32>
    %cst_5 = arith.constant dense<0.000000e+00> : vector<8xf32>
    %15 = vector.multi_reduction <add>, %14, %cst_5 [1] : vector<8x8xf32> to vector<8xf32>
    %16 = vector.shape_cast %15 : vector<8xf32> to vector<8x1xf32>
    %17 = tpu.reciprocal %16 {approx = true} : vector<8x1xf32> -> vector<8x1xf32>
    %18 = arith.truncf %14 : vector<8x8xf32> to vector<8x8xbf16>
    %cst_6 = arith.constant dense<0.000000e+00> : vector<8x128xf32>
    %19 = tpu.matmul %18, %8, %cst_6 {dimension_numbers = #tpu.dot_dimension_numbers<[1], [0], [0], [1], [0, 0, 1, 1], [], []>} : vector<8x8xbf16>, vector<8x128xbf16>, vector<8x128xf32> -> vector<8x128xf32>
    %20 = vector.broadcast %17 : vector<8x1xf32> to vector<8x128xf32>
    %21 = arith.mulf %19, %20 : vector<8x128xf32>
    %c0_7 = arith.constant 0 : index
    %c0_8 = arith.constant 0 : index
    %22 = vector.load %arg2[%c0_7, %c0_8] : memref<8x128xf32, #tpu.memory_space<vmem>>, vector<8x128xf32>
    tpu.vector_store %arg2[%c0_7, %c0_8], %21 {strides = array<i32>} : memref<8x128xf32, #tpu.memory_space<vmem>>, vector<8x128xf32>,
    return
  }
}

</mosaic_0001>

<bundles_post_ra>
// kernel: attention_fused.1
= control target key start
LH: loop header
LB: loop body
LE: loop exit
PB: predicated region body
PF: predicated region fallthrough
CT: control target
= control target key end

     0   :  { %7 = vsyncpa [#allocation3], 0  ;;  %s302_s0 = inlined_call_operand.vmem [shape: bf16[8,32], index: 0, kind: input, shape index: {}]   ;;  %s303_s1 = inlined_call_operand.hbm [shape: bf16[32,384], index: 1, kind: input, shape index: {}]   ;;  %s304_s2 = inlined_call_operand.hbm [shape: f32[8,128], index: 2, kind: output, shape index: {}]  }
   0x1   :  { %8 = vsyncpa [#allocation4], 0  ;;  %s15_s11 = sshll.u32 %s303_s1, 4  ;;  %s274_s12 = smov [#allocation2]   ;;  %s16_s11 = int_to_ptr.hbm [resolvable:$true] %s15_s11 }
   0x2   :  { %s17_s13 = sshll.u32 %s274_s12, 4  ;;  %s275_s14 = smov 192   ;;  %s18_s13 = int_to_ptr.vmem [resolvable:$true] %s17_s13 }
   0x3   :  { %s276_s15 = smov 12  }
   0x4   :  { %23 = dma.hbm_to_vmem [thread:$0]  %s16_s11, 768, %s18_s13, [#allocation3], %s275_s14, %s275_s14, %s276_s15  }
   0x5   :  { %270 = dma.done.wait [#allocation3], 768  }
   0x6   :  { %271 = vsyncadd [#allocation3], 4294966528  ;;  %v194_v0 = vld [vmem:[#allocation2 + $0x18] sm:$0xf]  ;;  %v212_v1 = vld [vmem:[#allocation2 + $0x20] sm:$0xf0] }
   0x7   :  { %v211_v2 = vld [vmem:[#allocation2 + $0x1c] sm:$0xf]  ;;  %v195_v3 = vor.u32 %v212_v1, %v194_v0  ;;  %v196_v4 = vld [vmem:[#allocation2 + $0x24] sm:$0xf0]  ;;  %v182_v5 = vld [vmem:[#allocation2] sm:$0xf] }
   0x8   :  { %v209_v6 = vld [vmem:[#allocation2 + $0x8] sm:$0xf0]  ;;  %v199_v7 = vor.u32 %v211_v2, %v196_v4  ;;  %v208_v8 = vld [vmem:[#allocation2 + $0x4] sm:$0xf]  ;;  %v184_v9 = vld [vmem:[#allocation2 + $0xc] sm:$0xf0] }
   0x9   :  { %80 = vmatpush.bf16.msra.mxu0 %v195_v3  ;;  %v183_v10 = vor.u32 %v209_v6, %v182_v5  ;;  %v187_v11 = vor.u32 %v208_v8, %v184_v9  ;;  %v29_v12 = vld [vmem:[%s302_s0] sm:$0xf]  ;;  %vm70_vm0 = vcmask 261120   ;;  %v213_v14 = vld [vmem:[#allocation2 + $0x28] sm:$0xf0]  ;;  %vm144_vm1 = vcmask 1043456  }
   0xa   :  { %93 = vmatpush.bf16.msra.mxu1 %v199_v7  ;;  %v202_v13 = vld [vmem:[#allocation2 + $0x20] sm:$0xf]  ;;  %v190_v15 = vld [vmem:[#allocation2 + $0x8] sm:$0xf]  ;;  %v210_v17 = vld [vmem:[#allocation2 + $0x10] sm:$0xf0] }
   0xb   :  { %v203_v16 = vor.u32 %v213_v14, %v202_v13  ;;  %v191_v18 = vor.u32 %v210_v17, %v190_v15  ;;  %vm129_vm2 = vcmask 64512   ;;  %s277_s0 = smov [#allocation5]   ;;  %s170_s20 = sshll.u32 %s304_s2, 4  ;;  %s171_s20 = int_to_ptr.hbm [resolvable:$true] %s170_s20 }
   0xc   :  { %s168_s17 = sshll.u32 %s277_s0, 4  ;;  %s169_s17 = int_to_ptr.vmem [resolvable:$true] %s168_s17 }
   0xd   :  { %81 = vmatpush.bf16.msra.mxu0 %v183_v10  ;;  %106 = vmatpush.bf16.msra.mxu2 %v203_v16 }
   0xe   :  { %94 = vmatpush.bf16.msra.mxu1 %v187_v11 }
  0x10   :  { %204 = vmatmul.msk.bf16.vlgmr.msra.gmra.mxu0 %vm70_vm0, %v29_v12 }
  0x11   :  { %205 = vmatmul.msk.bf16.vlgmr.msra.gmra.mxu1 %vm70_vm0, %v29_v12  ;;  %107 = vmatpush.bf16.msra.mxu2 %v191_v18 }
  0x14   :  { %206 = vmatmul.msk.bf16.vlgmr.msra.gmra.mxu2 %vm70_vm0, %v29_v12 }
  0x8d   :  { %v83_v19 = vpop.f32.mrf.mxu0 }
  0x8e   :  { %v96_v20 = vpop.f32.mrf.mxu1  ;;  %v113_v22 = vpack.c.bf16 %v83_v19, %v83_v19 }
  0x8f   :  { %v114_v21 = vpack.c.bf16 %v96_v20, %v96_v20 }
  0x91   :  { %123 = vmatpush.bf16.xpose.msra.mxu3 %v114_v21 }
  0x95   :  { %v85_v23 = vpop.f32.mrf.mxu0 }
  0x96   :  { %v98_v24 = vpop.f32.mrf.mxu1 }
  0x97   :  { %v109_v25 = vpop.f32.mrf.mxu2 }
  0x98   :  { %124 = vmatmul.bf16.vlgmr.msra.gmra.mxu3 %v113_v22  ;;  %v115_v26 = vpack.c.bf16 %v109_v25, %v109_v25 }
  0x9a   :  { %v146_v27 = vsel %vm144_vm1, %v115_v26, 0 }
  0x9b   :  { %155 = vmatpush.bf16.msrb.mxu0 %v146_v27 }
  0x9f   :  { %v111_v28 = vpop.f32.mrf.mxu2 }
 0x11b   :  { %v125_v29 = vpop.f32.mrf.mxu3 }
 0x11c   :  { %v130_v30 = vsel %vm129_vm2, %v125_v29, -inf }
 0x11d   :  { %131 = vmax.xlane.f32.xlu0 %v130_v30 }
 0x123   :  { %v127_v31 = vpop.f32.mrf.mxu3 }
 0x190   :  { %v132_v32 = vpop.xlane.xlu0 %131 }
 0x191   :  { %v133_v33 = vsub.f32 %v125_v29, %v132_v32 }
 0x193   :  { %v134_v34 = vmul.f32 1.442695, %v133_v33 }
 0x195   :  { %218 = vpow2.f32 %v134_v34 }
 0x19b   :  { %v219_v35 = vpop.eup %218 }
 0x19c   :  { %v136_v36 = vsel %vm129_vm2, %v219_v35, 0.0  ;;  %v140_v37 = vpack.c.bf16 %v219_v35, %v219_v35 }
 0x19d   :  { %137 = vadd.xlane.f32.xlu0 %v136_v36 }
 0x19e   :  { %207 = vmatmul.msk.bf16.vlgmr.msrb.gmra.mxu0 %vm129_vm2, %v140_v37 }
 0x210   :  { %v138_v38 = vpop.xlane.xlu0 %137 }
 0x211   :  { %220 = vrcp.f32 %v138_v38 }
 0x217   :  { %v221_v39 = vpop.eup %220 }
 0x21b   :  { %v157_v40 = vpop.f32.mrf.mxu0 }
 0x21c   :  { %v161_v41 = vmul.f32 %v221_v39, %v157_v40 }
 0x21e   :  { %162 = vst [vmem:[#allocation5] sm:$0xff] %v161_v41 }
 0x21f   :  { %173 = dma.vmem_to_hbm [thread:$0]  %s169_s17, 128, %s171_s20, [#allocation4]  }
 0x223   :  { %v159_v42 = vpop.f32.mrf.mxu0 }
 0x224   :  { %272 = dma.done.wait [#allocation4], 128  }
 0x225   :  { %273 = vsyncadd [#allocation4], 4294967168 }
 0x226   :  { %178 = vsyncpa [#allocation3], 1 }
 0x227   :  { %179 = vsyncpa [#allocation4], 1 }

</bundles_post_ra>
